<compile_context>
chip_gen: v7x
topology: tpu7x:2x2x1
jax: 0.10.0
libtpu: 0.0.40
codegen_flags: <defaults>
</compile_context>

<pallas_src>
import functools

import jax
import jax.numpy as jnp
from jax.experimental import pallas as pl
from jax.experimental.pallas import tpu as pltpu


def _ce_kernel(logits_ref, picked_ref, out_ref, m_ref, s_ref, *,
               num_classes, class_tile):
    """One (TM, TC) logits tile: streaming logsumexp over the class axis.

    logits_ref: (TM, TC) float (any float dtype; cast to f32 in-kernel)
    picked_ref: (TM, 1)  f32   -- logits[row, label[row]] (gathered in wrapper)
    out_ref:    (TM, 1)  f32   -- per-row CE, written on the last class tile
    m_ref/s_ref:(TM, 1)  f32   -- running max / running sum(exp) scratch
    """
    j = pl.program_id(1)

    @pl.when(j == 0)
    def _():
        m_ref[...] = jnp.full(m_ref.shape, -jnp.inf, dtype=m_ref.dtype)
        s_ref[...] = jnp.zeros(s_ref.shape, dtype=s_ref.dtype)

    x = logits_ref[...].astype(jnp.float32)                        # (TM, TC)

    # Mask out-of-range classes only when the class axis does not tile evenly.
    # Static Python decision -> zero cost in the common (single-tile) case.
    if num_classes % class_tile != 0:
        col = jax.lax.broadcasted_iota(jnp.int32, x.shape, 1) + j * class_tile
        x = jnp.where(col < num_classes, x, -jnp.inf)

    # Online logsumexp update.
    m_prev = m_ref[...]                                            # (TM, 1)
    m_new = jnp.maximum(m_prev, jnp.max(x, axis=-1, keepdims=True))
    s_ref[...] = (s_ref[...] * jnp.exp(m_prev - m_new)
                  + jnp.sum(jnp.exp(x - m_new), axis=-1, keepdims=True))
    m_ref[...] = m_new

    @pl.when(j == pl.num_programs(1) - 1)
    def _():
        lse = m_ref[...] + jnp.log(s_ref[...])                     # (TM, 1)
        out_ref[...] = lse - picked_ref[...]


def _round_up(x, m):
    return (x + m - 1) // m * m


# Total live VMEM footprint per grid step we aim for, and the scoped limit we
# request (safe on v5e/v6e 128 MiB and v7x 64 MiB physical VMEM).
_VMEM_BUDGET = 24 * 1024 * 1024
_VMEM_LIMIT = 48 * 1024 * 1024


def _choose_tiles(n, c, itemsize):
    """Pick (row_tile, class_tile) from the TOTAL in-kernel footprint:
    2x double-buffered logits block (input dtype) + ~3 live f32 temporaries."""
    per_elem = 2 * itemsize + 12  # bytes of live VMEM per logits element

    # Prefer the full class axis; tile it only when even a minimal 8-row slab
    # would blow the budget (huge class counts, e.g. Glint360K ~360K).
    tc = c
    if 8 * tc * per_elem > _VMEM_BUDGET:
        tc = (_VMEM_BUDGET // (8 * per_elem)) // 128 * 128
        tc = max(128, min(tc, c))

    # Row tile: as big as fits the budget at this class tile.
    tm = max(8, (_VMEM_BUDGET // (tc * per_elem)) // 8 * 8)
    # Keep >= ~4 row tiles when the batch allows it: 2 tiles per v7x
    # TensorCore for megacore sharding + >=2-deep DMA pipelining.
    if n >= 32:
        tm = min(tm, max(8, (n // 4) // 8 * 8))
    tm = min(tm, _round_up(n, 8))
    return tm, tc


def focal_loss(logits, targets, *, gamma=2.0, eps=1e-7):
    """logits: (N, C) float (f32 or bf16); targets: (N,) int. Returns scalar f32."""
    del eps  # unused in the PyTorch forward as well
    n, c = logits.shape
    itemsize = jnp.dtype(logits.dtype).itemsize
    tm, tc = _choose_tiles(n, c, itemsize)
    grid = (pl.cdiv(n, tm), pl.cdiv(c, tc))

    # O(N) gather of the label logit in the wrapper; the kernel then only does
    # the memory-bound logsumexp over the (N, C) logits.
    idx = targets.astype(jnp.int32).reshape(n, 1)
    picked = jnp.take_along_axis(logits, idx, axis=1).astype(jnp.float32)

    kernel = functools.partial(_ce_kernel, num_classes=c, class_tile=tc)

    ce_rows = pl.pallas_call(
        kernel,
        out_shape=jax.ShapeDtypeStruct((n, 1), jnp.float32),
        grid=grid,
        in_specs=[
            pl.BlockSpec((tm, tc), lambda i, j: (i, j)),   # logits tile
            pl.BlockSpec((tm, 1), lambda i, j: (i, 0)),    # picked label logit
        ],
        out_specs=pl.BlockSpec((tm, 1), lambda i, j: (i, 0)),
        scratch_shapes=[
            pltpu.VMEM((tm, 1), jnp.float32),   # running max
            pltpu.VMEM((tm, 1), jnp.float32),   # running sum of exp
        ],
        compiler_params=pltpu.CompilerParams(
            dimension_semantics=("parallel", "arbitrary"),
            vmem_limit_bytes=_VMEM_LIMIT,
        ),
    )(logits, picked)

    # Mean CE over the batch, then the (scalar) focal transform in the wrapper.
    ce = jnp.sum(ce_rows[:, 0]) / jnp.float32(n)
    p = jnp.exp(-ce)
    # Clamp avoids NaN from pow of a tiny negative base with non-integer gamma.
    return jnp.maximum(1.0 - p, 0.0) ** jnp.float32(gamma) * ce


def _reference_focal_loss(logits, targets, *, gamma=2.0):
    logits = logits.astype(jnp.float32)
    log_probs = jax.nn.log_softmax(logits, axis=1)
    nll = -jnp.take_along_axis(
        log_probs, targets.astype(jnp.int32)[:, None], axis=1)[:, 0]
    ce = jnp.mean(nll)
    p = jnp.exp(-ce)
    return (1.0 - p) ** gamma * ce


if __name__ == "__main__":
    # Small shapes consistent with the module: batch N=8, num_classes C=128.
    N, C = 8, 128
    GAMMA = 2.0

    key = jax.random.PRNGKey(0)
    k_logits, k_labels = jax.random.split(key)
    logits_f32 = jax.random.normal(k_logits, (N, C), dtype=jnp.float32)
    labels = jax.random.randint(k_labels, (N,), 0, C, dtype=jnp.int32)

    # f32 path
    loss = jax.block_until_ready(focal_loss(logits_f32, labels, gamma=GAMMA))
    ref = _reference_focal_loss(logits_f32, labels, gamma=GAMMA)
    assert jnp.allclose(loss, ref, rtol=1e-5, atol=1e-5), (loss, ref)

    # bf16 logits path (halves HBM traffic; in-kernel math stays f32).
    logits_bf16 = logits_f32.astype(jnp.bfloat16)
    loss_bf16 = jax.block_until_ready(focal_loss(logits_bf16, labels, gamma=GAMMA))
    ref_bf16 = _reference_focal_loss(logits_bf16, labels, gamma=GAMMA)
    assert jnp.allclose(loss_bf16, ref_bf16, rtol=1e-4, atol=1e-4), (loss_bf16, ref_bf16)

    print("KERNEL_OK")
</pallas_src>

<mosaic_0001>
module attributes {stable_mosaic.version = 11 : i64} {
  func.func @_ce_kernel(%arg0: i32, %arg1: i32, %arg2: memref<8x128xf32, #tpu.memory_space<vmem>>, %arg3: memref<8x1xf32, #tpu.memory_space<vmem>>, %arg4: memref<8x1xf32, #tpu.memory_space<vmem>>, %arg5: memref<8x1xf32, #tpu.memory_space<vmem>>, %arg6: memref<8x1xf32, #tpu.memory_space<vmem>>) attributes {dimension_semantics = [#tpu.dimension_semantics<parallel>, #tpu.dimension_semantics<arbitrary>], iteration_bounds = array<i64: 1, 1>, scalar_prefetch = 0 : i64, scratch_operands = 2 : i64, tpu.core_type = #tpu.core_type<tc>, window_params = [{transform_indices = @transform_0, window_bounds = array<i64: 8, 128>}, {transform_indices = @transform_1, window_bounds = array<i64: 8, 1>}, {transform_indices = @transform_2, window_bounds = array<i64: 8, 1>}]} {
    %c0_i32 = arith.constant 0 : i32
    %0 = arith.cmpi eq, %arg1, %c0_i32 : i32
    %1 = arith.extui %0 : i1 to i32
    %c0_i32_0 = arith.constant 0 : i32
    %2 = arith.cmpi ne, %1, %c0_i32_0 : i32
    scf.if %2 {
      %cst_13 = arith.constant 0xFF800000 : f32
      %23 = vector.broadcast %cst_13 : f32 to vector<8x1xf32>
      %c0_14 = arith.constant 0 : index
      %c0_15 = arith.constant 0 : index
      %24 = vector.load %arg5[%c0_14, %c0_15] : memref<8x1xf32, #tpu.memory_space<vmem>>, vector<8x1xf32>
      tpu.vector_store %arg5[%c0_14, %c0_15], %23 {strides = array<i32>} : memref<8x1xf32, #tpu.memory_space<vmem>>, vector<8x1xf32>,
      %cst_16 = arith.constant 0.000000e+00 : f32
      %25 = vector.broadcast %cst_16 : f32 to vector<8x1xf32>
      %c0_17 = arith.constant 0 : index
      %c0_18 = arith.constant 0 : index
      %26 = vector.load %arg6[%c0_17, %c0_18] : memref<8x1xf32, #tpu.memory_space<vmem>>, vector<8x1xf32>
      tpu.vector_store %arg6[%c0_17, %c0_18], %25 {strides = array<i32>} : memref<8x1xf32, #tpu.memory_space<vmem>>, vector<8x1xf32>,
    } else {
    }
    %c0 = arith.constant 0 : index
    %c0_1 = arith.constant 0 : index
    %3 = vector.load %arg2[%c0, %c0_1] : memref<8x128xf32, #tpu.memory_space<vmem>>, vector<8x128xf32>
    %c0_2 = arith.constant 0 : index
    %c0_3 = arith.constant 0 : index
    %4 = vector.load %arg5[%c0_2, %c0_3] : memref<8x1xf32, #tpu.memory_space<vmem>>, vector<8x1xf32>
    %cst = arith.constant dense<0xFF800000> : vector<8xf32>
    %5 = vector.multi_reduction <maximumf>, %3, %cst [1] : vector<8x128xf32> to vector<8xf32>
    %6 = vector.shape_cast %5 : vector<8xf32> to vector<8x1xf32>
    %7 = arith.maximumf %4, %6 : vector<8x1xf32>
    %c0_4 = arith.constant 0 : index
    %c0_5 = arith.constant 0 : index
    %8 = vector.load %arg6[%c0_4, %c0_5] : memref<8x1xf32, #tpu.memory_space<vmem>>, vector<8x1xf32>
    %9 = arith.subf %4, %7 : vector<8x1xf32>
    %10 = math.exp %9 : vector<8x1xf32>
    %11 = arith.mulf %8, %10 : vector<8x1xf32>
    %12 = vector.broadcast %7 : vector<8x1xf32> to vector<8x128xf32>
    %13 = arith.subf %3, %12 : vector<8x128xf32>
    %14 = math.exp %13 : vector<8x128xf32>
    %cst_6 = arith.constant dense<0.000000e+00> : vector<8xf32>
    %15 = vector.multi_reduction <add>, %14, %cst_6 [1] : vector<8x128xf32> to vector<8xf32>
    %16 = vector.shape_cast %15 : vector<8xf32> to vector<8x1xf32>
    %17 = arith.addf %11, %16 : vector<8x1xf32>
    %c0_7 = arith.constant 0 : index
    %c0_8 = arith.constant 0 : index
    %18 = vector.load %arg6[%c0_7, %c0_8] : memref<8x1xf32, #tpu.memory_space<vmem>>, vector<8x1xf32>
    tpu.vector_store %arg6[%c0_7, %c0_8], %17 {strides = array<i32>} : memref<8x1xf32, #tpu.memory_space<vmem>>, vector<8x1xf32>,
    %c0_9 = arith.constant 0 : index
    %c0_10 = arith.constant 0 : index
    %19 = vector.load %arg5[%c0_9, %c0_10] : memref<8x1xf32, #tpu.memory_space<vmem>>, vector<8x1xf32>
    tpu.vector_store %arg5[%c0_9, %c0_10], %7 {strides = array<i32>} : memref<8x1xf32, #tpu.memory_space<vmem>>, vector<8x1xf32>,
    %c0_i32_11 = arith.constant 0 : i32
    %20 = arith.cmpi eq, %arg1, %c0_i32_11 : i32
    %21 = arith.extui %20 : i1 to i32
    %c0_i32_12 = arith.constant 0 : i32
    %22 = arith.cmpi ne, %21, %c0_i32_12 : i32
    scf.if %22 {
      %c0_13 = arith.constant 0 : index
      %c0_14 = arith.constant 0 : index
      %23 = vector.load %arg5[%c0_13, %c0_14] : memref<8x1xf32, #tpu.memory_space<vmem>>, vector<8x1xf32>
      %c0_15 = arith.constant 0 : index
      %c0_16 = arith.constant 0 : index
      %24 = vector.load %arg6[%c0_15, %c0_16] : memref<8x1xf32, #tpu.memory_space<vmem>>, vector<8x1xf32>
      %25 = math.log %24 : vector<8x1xf32>
      %26 = arith.addf %23, %25 : vector<8x1xf32>
      %c0_17 = arith.constant 0 : index
      %c0_18 = arith.constant 0 : index
      %27 = vector.load %arg3[%c0_17, %c0_18] : memref<8x1xf32, #tpu.memory_space<vmem>>, vector<8x1xf32>
      %28 = arith.subf %26, %27 : vector<8x1xf32>
      %c0_19 = arith.constant 0 : index
      %c0_20 = arith.constant 0 : index
      %29 = vector.load %arg4[%c0_19, %c0_20] : memref<8x1xf32, #tpu.memory_space<vmem>>, vector<8x1xf32>
      tpu.vector_store %arg4[%c0_19, %c0_20], %28 {strides = array<i32>} : memref<8x1xf32, #tpu.memory_space<vmem>>, vector<8x1xf32>,
    } else {
    }
    return
  }
  func.func @transform_0(%arg0: i32, %arg1: i32) -> (i32, i32) {
    %c0_i32 = arith.constant 0 : i32
    return %arg0, %arg1 : i32, i32
  }
  func.func @transform_1(%arg0: i32, %arg1: i32) -> (i32, i32) {
    %c0_i32 = arith.constant 0 : i32
    %c0_i32_0 = arith.constant 0 : i32
    return %arg0, %c0_i32 : i32, i32
  }
  func.func @transform_2(%arg0: i32, %arg1: i32) -> (i32, i32) {
    %c0_i32 = arith.constant 0 : i32
    %c0_i32_0 = arith.constant 0 : i32
    return %arg0, %c0_i32 : i32, i32
  }
}

</mosaic_0001>

<bundles_post_ra>
// kernel: tpu_custom_call.1
= control target key start
LH: loop header
LB: loop body
LE: loop exit
PB: predicated region body
PF: predicated region fallthrough
CT: control target
= control target key end

     0   :  { %vm15_vm0 = vcmask 7168   ;;  %v67_v1 = vmov -inf   ;;  %v68_v2 = vmov 0   ;;  %v69_v3 = vmov 0.0   ;;  %s99_s0 = inlined_call_operand.vmem [shape: f32[8,128], index: 0, kind: input, shape index: {}]   ;;  %s100_s1 = inlined_call_operand.vmem [shape: f32[8,1], index: 1, kind: input, shape index: {}]   ;;  %s101_s2 = inlined_call_operand.vmem [shape: f32[8,1], index: 2, kind: output, shape index: {}]  }
   0x1   :  { %v18_v0 = vld [vmem:[%s99_s0] sm:$0xff]  ;;  %16 = vst.msk [vmem:[#allocation2] sm:$0xff] %vm15_vm0, %v67_v1  ;;  %60 = vset.pattern.permute.xlu0 %v68_v2  ;;  %17 = vst.msk [vmem:[#allocation3] sm:$0xff] %vm15_vm0, %v69_v3 }
   0x2   :  { %20 = vmax.xlane.f32.xlu0 %v18_v0  ;;  %v50_v22 = vld [vmem:[%s100_s1] sm:$0xff] }
   0x8   :  { %v19_v4 = vld [vmem:[#allocation2] sm:$0xff]  ;;  %v23_v14 = vld [vmem:[#allocation3] sm:$0xff] }
  0x8f   :  { %v21_v5 = vpop.xlane.xlu0 %20 }
  0x90   :  { %v22_v6 = vmax.f32 %v19_v4, %v21_v5 }
  0x92   :  { %v24_v7 = vsub.f32 %v19_v4, %v22_v6  ;;  %41 = vst.msk [vmem:[#allocation2] sm:$0xff] %vm15_vm0, %v22_v6  ;;  %30 = vperm.xlu0 %60, %v22_v6  }
  0x94   :  { %v25_v12 = vmul.f32 1.442695, %v24_v7 }
  0x99   :  { %v45_v21 = vld [vmem:[#allocation2] sm:$0xff] }
 0x111   :  { %v31_v8 = vpop.permute.xlu0 %30 }
 0x112   :  { %v33_v9 = vsub.f32 %v18_v0, %v31_v8 }
 0x114   :  { %v34_v10 = vmul.f32 1.442695, %v33_v9 }
 0x116   :  { %61 = vpow2.f32 %v34_v10 }
 0x117   :  { %63 = vpow2.f32 %v25_v12 }
 0x120   :  { %v62_v11 = vpop.eup %61 }
 0x121   :  { %36 = vadd.xlane.f32.xlu1 %v62_v11  ;;  %v64_v13 = vpop.eup %63 }
 0x122   :  { %v27_v15 = vmul.f32 %v64_v13, %v23_v14 }
 0x1ae   :  { %v37_v16 = vpop.xlane.xlu1 %36 }
 0x1af   :  { %v38_v17 = vadd.f32 %v37_v16, %v27_v15 }
 0x1b1   :  { %40 = vst.msk [vmem:[#allocation3] sm:$0xff] %vm15_vm0, %v38_v17 }
 0x1b8   :  { %v46_v18 = vld [vmem:[#allocation3] sm:$0xff] }
 0x1b9   :  { %65 = vlog2.f32 %v46_v18 }
 0x1c3   :  { %v66_v19 = vpop.eup %65 }
 0x1c4   :  { %v48_v20 = vmul.f32 0.6931472, %v66_v19 }
 0x1c6   :  { %v49_v23 = vadd.f32 %v48_v20, %v45_v21 }
 0x1c8   :  { %v51_v24 = vsub.f32 %v49_v23, %v50_v22 }
 0x1ca   :  { %52 = vst.msk [vmem:[%s101_s2] sm:$0xff] %vm15_vm0, %v51_v24 }

</bundles_post_ra>
